<compile_context>
chip_gen: v6e
topology: v6e:2x2x1
jax: 0.10.0
libtpu: 0.0.40
codegen_flags: <defaults>
</compile_context>

<pallas_src>
import functools

import jax
import jax.numpy as jnp
from jax.experimental import pallas as pl
from jax.experimental.pallas import tpu as pltpu


def conv_ts_embedding_kernel(x_ref, wfc_ref, bfc_ref, wconv_ref, bconv_ref,
                             out_ref, *, seq_len):
    """One grid step: a slab of M = TG*L rows, lanes = G*E packed sequences.

    x_ref:     (M, G*C_in)      packed input rows (row = group_batch*L + t)
    wfc_ref:   (G*C_in, G*E)    block-diagonal fc weight
    bfc_ref:   (1, G*E)         fc bias, tiled across lane groups
    wconv_ref: (D, K*G*E, G*E)  block-diag conv weights, K taps on contraction
    bconv_ref: (D, G*E)         conv biases, tiled across lane groups
    out_ref:   (M, G*E)
    """
    conv_depth, kw, width = wconv_ref.shape
    kernel_size = kw // width
    m, cin_w = x_ref.shape

    x = x_ref[...].astype(jnp.float32)

    # fc: Linear(C_in -> E), block-diagonal across the packed lane groups.
    # A degenerate 1-wide contraction stays a VPU broadcast multiply-add.
    if cin_w == 1:
        h = x * wfc_ref[...] + bfc_ref[...]
    else:
        h = jnp.dot(x, wfc_ref[...],
                    preferred_element_type=jnp.float32) + bfc_ref[...]

    # Within-sequence time index rebuilt in-kernel (no HBM stream): block rows
    # are (group_batch, t) flattened with t fastest, and every block starts at
    # a multiple of L rows, so t = row % L.  Masks are hoisted out of the
    # depth loop and stay (M, 1); jnp.where broadcasts them across lanes.
    t_idx = jax.lax.broadcasted_iota(jnp.int32, (m, 1), 0) % seq_len
    keep = [t_idx >= s for s in range(1, kernel_size)]        # (M, 1) bool each

    # Causal conv stack: each layer is ONE fused matmul
    #   out = [shift(h,K-1) | ... | shift(h,1) | h] @ Wstack + b
    # with the K shifted copies concatenated along lanes (contraction K*G*E).
    for d in range(conv_depth):
        cols = []
        for k in range(kernel_size):
            shift = (kernel_size - 1) - k                     # causal left pad
            if shift == 0:
                cols.append(h)
            else:
                hs = pltpu.roll(h, shift, axis=0)             # sublane rotate (XLU)
                cols.append(jnp.where(keep[shift - 1], hs, 0.0))
        stacked = cols[0] if kernel_size == 1 else jnp.concatenate(cols, axis=1)
        h = jnp.dot(stacked.astype(wconv_ref.dtype), wconv_ref[d],
                    preferred_element_type=jnp.float32)
        h = h + bconv_ref[d, :][None, :]

    out_ref[...] = h.astype(out_ref.dtype)


def _pick_lane_groups(batch, emb):
    """Sequences packed along lanes: largest divisor of the batch whose packed
    lane width G*E stays within one 128-lane vreg."""
    max_g = max(1, 128 // emb)
    for g in range(min(batch, max_g), 0, -1):
        if batch % g == 0:
            return g
    return 1


def _tpu_budget():
    """(per-step working-set budget, scoped VMEM limit, TensorCores/chip).

    Queries pltpu.get_tpu_info() when available; otherwise falls back to the
    most conservative assumption (v7x: 64 MiB per TensorCore, 1 core)."""
    vmem_cap = 64 << 20
    num_cores = 1
    try:
        info = pltpu.get_tpu_info()
        for attr in ("vmem_capacity_bytes", "vmem_bytes", "vmem_size_bytes"):
            v = getattr(info, attr, None)
            if isinstance(v, int) and v > 0:
                vmem_cap = v
                break
        for attr in ("num_cores", "tensorcores_per_chip", "core_count"):
            v = getattr(info, attr, None)
            if isinstance(v, int) and v > 0:
                num_cores = v
                break
    except Exception:
        pass
    vmem_limit = min(vmem_cap * 3 // 4, 96 << 20)   # 48 MiB on 64 MiB parts,
    step_budget = vmem_limit // 2                   # 96/48 MiB on 128 MiB parts
    return step_budget, vmem_limit, num_cores


def _pick_group_tile(num_groups, seq_len, cin_w, width, ksize,
                     step_budget, num_cores):
    """Largest group tile whose per-step working set fits the budget, keeping
    an (8,128)-friendly row count; with >=2 TensorCores also prefer a grid
    length that is a multiple of the core count ("parallel" load balance)."""
    # f32 bytes per flattened row: double-buffered x/out blocks + h + the
    # (K*W) stacked matmul operand + the K-1 rolled/masked copies.
    per_row = 4 * (2 * cin_w + 2 * width + width
                   + ksize * width + (ksize - 1) * width)
    cap = max(1, step_budget // max(per_row * seq_len, 1))

    def ok(tg):
        return num_groups % tg == 0 and ((tg * seq_len) % 8 == 0
                                         or tg == num_groups)

    cands = [tg for tg in range(1, num_groups + 1) if ok(tg)]
    fitting = [tg for tg in cands if tg <= cap] or [min(cands)]
    best = max(fitting)
    if num_cores >= 2 and num_groups >= num_cores:
        balanced = [tg for tg in fitting if (num_groups // tg) % num_cores == 0]
        if balanced:
            best = max(balanced)
    return best


def conv_ts_embedding(x, wfc, bfc, wconv, bconv, *, kernel_size, conv_depth,
                      conv_dot_dtype=jnp.bfloat16, group_tile=None):
    B, L, C_in = x.shape
    E = wfc.shape[1]
    D, K = conv_depth, kernel_size
    assert wconv.shape == (D, K, E, E)
    assert bconv.shape == (D, E)

    # Lane packing: G sequences per lane group, lane width W = G*E (<=128).
    G = _pick_lane_groups(B, E)
    NG = B // G
    W = G * E
    CW = G * C_in

    # Wrapper-side re-layout (free XLA reshapes): rows = (group batch, time),
    # lanes = (packed sequence, channel).
    xp = (x.reshape(NG, G, L, C_in).transpose(0, 2, 1, 3)
           .reshape(NG * L, CW))

    # Block-diagonal weights so every layer stays one fused matmul per step.
    eye = jnp.eye(G, dtype=jnp.float32)
    wfc_bd = jnp.einsum('gh,io->giho', eye,
                        wfc.astype(jnp.float32)).reshape(CW, W)
    bfc_bd = jnp.tile(bfc.reshape(1, E).astype(jnp.float32), (1, G))
    wconv_bd = jnp.einsum('gh,dkio->dkgiho', eye,
                          wconv.astype(jnp.float32)).reshape(D, K * W, W)
    wconv_bd = wconv_bd.astype(conv_dot_dtype)      # pre-cast MXU RHS (bf16 ok)
    bconv_bd = jnp.tile(bconv.astype(jnp.float32), (1, G))

    step_budget, vmem_limit, num_cores = _tpu_budget()
    TG = (_pick_group_tile(NG, L, CW, W, K, step_budget, num_cores)
          if group_tile is None else group_tile)
    assert NG % TG == 0
    M = TG * L
    grid = (NG // TG,)

    kernel = functools.partial(conv_ts_embedding_kernel, seq_len=L)

    out2d = pl.pallas_call(
        kernel,
        out_shape=jax.ShapeDtypeStruct((NG * L, W), x.dtype),
        grid=grid,
        in_specs=[
            pl.BlockSpec((M, CW), lambda i: (i, 0)),
            pl.BlockSpec((CW, W), lambda i: (0, 0)),
            pl.BlockSpec((1, W), lambda i: (0, 0)),
            pl.BlockSpec((D, K * W, W), lambda i: (0, 0, 0)),
            pl.BlockSpec((D, W), lambda i: (0, 0)),
        ],
        out_specs=pl.BlockSpec((M, W), lambda i: (i, 0)),
        compiler_params=pltpu.CompilerParams(
            dimension_semantics=("parallel",),
            vmem_limit_bytes=vmem_limit,
        ),
    )(xp, wfc_bd, bfc_bd, wconv_bd, bconv_bd)

    # Un-pack lanes back to (B, L, E) (free wrapper-side relayout).
    return (out2d.reshape(NG, L, G, E).transpose(0, 2, 1, 3)
                 .reshape(B, L, E))


def reference(x, wfc, bfc, wconv, bconv, kernel_size, conv_depth):
    """Plain-JAX reference mirroring the PyTorch forward semantics."""
    h = x @ wfc + bfc                                         # (B, L, E)
    L = h.shape[1]
    for d in range(conv_depth):
        hp = jnp.pad(h, ((0, 0), (kernel_size - 1, 0), (0, 0)))   # F.pad left
        new_h = jnp.broadcast_to(bconv[d][None, None, :], h.shape)
        for k in range(kernel_size):
            new_h = new_h + jnp.einsum('bli,io->blo',
                                       hp[:, k:k + L, :], wconv[d, k])
        h = new_h
    return h


if __name__ == "__main__":
    # Module hyper-params
    embedding_dim = 32
    kernel_size = 3
    conv_depth = 4
    input_channel = 1

    # Small example shapes: x is (batch, seq_len, input_channel)
    B, L = 2, 16

    key = jax.random.PRNGKey(0)
    kx, kwf, kbf, kwc, kbc = jax.random.split(key, 5)

    x = jax.random.normal(kx, (B, L, input_channel), dtype=jnp.float32)

    # Deterministic parameter init (synthetic; shapes match nn.Linear / nn.Conv1d).
    # fc: PyTorch weight is (E, C_in); we store its transpose (C_in, E).
    wfc = 0.1 * jax.random.normal(kwf, (input_channel, embedding_dim), jnp.float32)
    bfc = 0.1 * jax.random.normal(kbf, (1, embedding_dim), jnp.float32)
    # conv weights: PyTorch (E_out, E_in, K) per layer; stored as (D, K, E_in, E_out).
    wconv = 0.1 * jax.random.normal(
        kwc, (conv_depth, kernel_size, embedding_dim, embedding_dim), jnp.float32)
    bconv = 0.1 * jax.random.normal(kbc, (conv_depth, embedding_dim), jnp.float32)

    ref = reference(x, wfc, bfc, wconv, bconv, kernel_size, conv_depth)

    # Exact path (f32 MXU inputs): must match the reference tightly.
    out_f32 = conv_ts_embedding(x, wfc, bfc, wconv, bconv,
                                kernel_size=kernel_size, conv_depth=conv_depth,
                                conv_dot_dtype=jnp.float32)
    out_f32 = jax.block_until_ready(out_f32)
    assert out_f32.shape == (B, L, embedding_dim)
    assert jnp.allclose(out_f32, ref, atol=1e-4, rtol=1e-4), "f32 mismatch vs reference"

    # Fast path (bf16 MXU inputs, f32 accumulation): relaxed tolerance.
    out_bf16 = conv_ts_embedding(x, wfc, bfc, wconv, bconv,
                                 kernel_size=kernel_size, conv_depth=conv_depth,
                                 conv_dot_dtype=jnp.bfloat16)
    out_bf16 = jax.block_until_ready(out_bf16)
    assert out_bf16.shape == (B, L, embedding_dim)
    assert jnp.allclose(out_bf16, ref, atol=5e-2, rtol=5e-2), "bf16 mismatch vs reference"

    print("KERNEL_OK")
</pallas_src>

<mosaic_0001>
module attributes {stable_mosaic.version = 11 : i64} {
  func.func @conv_ts_embedding_kernel(%arg0: i32, %arg1: memref<16x2xf32, #tpu.memory_space<vmem>>, %arg2: memref<2x64xf32, #tpu.memory_space<vmem>>, %arg3: memref<1x64xf32, #tpu.memory_space<vmem>>, %arg4: memref<4x192x64xf32, #tpu.memory_space<vmem>>, %arg5: memref<4x64xf32, #tpu.memory_space<vmem>>, %arg6: memref<16x64xf32, #tpu.memory_space<vmem>>) attributes {dimension_semantics = [#tpu.dimension_semantics<parallel>], iteration_bounds = array<i64: 1>, scalar_prefetch = 0 : i64, scratch_operands = 0 : i64, tpu.core_type = #tpu.core_type<tc>, window_params = [{transform_indices = @transform_0, window_bounds = array<i64: 16, 2>}, {pipeline_mode = #tpu.pipeline_mode<synchronous>, transform_indices = @transform_1, window_bounds = array<i64: 2, 64>}, {pipeline_mode = #tpu.pipeline_mode<synchronous>, transform_indices = @transform_2, window_bounds = array<i64: 1, 64>}, {pipeline_mode = #tpu.pipeline_mode<synchronous>, transform_indices = @transform_3, window_bounds = array<i64: 4, 192, 64>}, {pipeline_mode = #tpu.pipeline_mode<synchronous>, transform_indices = @transform_4, window_bounds = array<i64: 4, 64>}, {transform_indices = @transform_5, window_bounds = array<i64: 16, 64>}]} {
    %c0 = arith.constant 0 : index
    %c0_0 = arith.constant 0 : index
    %0 = vector.load %arg1[%c0, %c0_0] : memref<16x2xf32, #tpu.memory_space<vmem>>, vector<16x2xf32>
    %c0_1 = arith.constant 0 : index
    %c0_2 = arith.constant 0 : index
    %1 = vector.load %arg2[%c0_1, %c0_2] : memref<2x64xf32, #tpu.memory_space<vmem>>, vector<2x64xf32>
    %cst = arith.constant dense<0.000000e+00> : vector<16x64xf32>
    %2 = tpu.matmul %0, %1, %cst {dimension_numbers = #tpu.dot_dimension_numbers<[1], [0], [0], [1], [0, 0, 1, 1], [], []>} : vector<16x2xf32>, vector<2x64xf32>, vector<16x64xf32> -> vector<16x64xf32>
    %c0_3 = arith.constant 0 : index
    %c0_4 = arith.constant 0 : index
    %3 = vector.load %arg3[%c0_3, %c0_4] : memref<1x64xf32, #tpu.memory_space<vmem>>, vector<1x64xf32>
    %4 = vector.broadcast %3 : vector<1x64xf32> to vector<16x64xf32>
    %5 = arith.addf %2, %4 : vector<16x64xf32>
    %6 = tpu.iota {dimensions = array<i32: 0>} : vector<16x1xi32>
    %c16_i32 = arith.constant 16 : i32
    %c0_i32 = arith.constant 0 : i32
    %7 = arith.cmpi eq, %c16_i32, %c0_i32 : i32
    %c1_i32 = arith.constant 1 : i32
    %8 = arith.select %7, %c1_i32, %c16_i32 : i32
    %9 = vector.broadcast %8 : i32 to vector<16x1xi32>
    %10 = arith.remsi %6, %9 : vector<16x1xi32>
    %c0_i32_5 = arith.constant 0 : i32
    %11 = vector.broadcast %c0_i32_5 : i32 to vector<16x1xi32>
    %12 = arith.cmpi ne, %10, %11 : vector<16x1xi32>
    %c0_i32_6 = arith.constant 0 : i32
    %13 = vector.broadcast %c0_i32_6 : i32 to vector<16x1xi32>
    %14 = arith.cmpi slt, %10, %13 : vector<16x1xi32>
    %c0_i32_7 = arith.constant 0 : i32
    %15 = arith.cmpi slt, %8, %c0_i32_7 : i32
    %16 = vector.broadcast %15 : i1 to vector<16x1xi1>
    %17 = vector.broadcast %16 : vector<16x1xi1> to vector<16x1xi1>
    %18 = arith.xori %14, %17 : vector<16x1xi1>
    %19 = arith.andi %18, %12 : vector<16x1xi1>
    %20 = vector.broadcast %8 : i32 to vector<16x1xi32>
    %21 = arith.addi %10, %20 : vector<16x1xi32>
    %22 = arith.select %19, %21, %10 : vector<16x1xi1>, vector<16x1xi32>
    %c1_i32_8 = arith.constant 1 : i32
    %23 = vector.broadcast %c1_i32_8 : i32 to vector<16x1xi32>
    %24 = arith.cmpi sge, %22, %23 : vector<16x1xi32>
    %c2_i32 = arith.constant 2 : i32
    %25 = vector.broadcast %c2_i32 : i32 to vector<16x1xi32>
    %26 = arith.cmpi sge, %22, %25 : vector<16x1xi32>
    %c2_i32_9 = arith.constant 2 : i32
    %27 = tpu.dynamic_rotate %5 by %c2_i32_9 dim 0 : vector<16x64xf32>, i32 -> vector<16x64xf32>
    %cst_10 = arith.constant 0.000000e+00 : f32
    %28 = vector.shape_cast %26 : vector<16x1xi1> to vector<16x1xi1>
    %29 = vector.broadcast %28 : vector<16x1xi1> to vector<16x64xi1>
    %30 = vector.broadcast %cst_10 : f32 to vector<16x64xf32>
    %31 = arith.select %29, %27, %30 : vector<16x64xi1>, vector<16x64xf32>
    %c1_i32_11 = arith.constant 1 : i32
    %32 = tpu.dynamic_rotate %5 by %c1_i32_11 dim 0 : vector<16x64xf32>, i32 -> vector<16x64xf32>
    %cst_12 = arith.constant 0.000000e+00 : f32
    %33 = vector.shape_cast %24 : vector<16x1xi1> to vector<16x1xi1>
    %34 = vector.broadcast %33 : vector<16x1xi1> to vector<16x64xi1>
    %35 = vector.broadcast %cst_12 : f32 to vector<16x64xf32>
    %36 = arith.select %34, %32, %35 : vector<16x64xi1>, vector<16x64xf32>
    %37 = tpu.concatenate %31, %36, %5 in 1 : vector<16x64xf32>, vector<16x64xf32>, vector<16x64xf32> -> vector<16x192xf32>
    %c0_13 = arith.constant 0 : index
    %c0_14 = arith.constant 0 : index
    %c0_15 = arith.constant 0 : index
    %38 = vector.load %arg4[%c0_13, %c0_14, %c0_15] : memref<4x192x64xf32, #tpu.memory_space<vmem>>, vector<1x192x64xf32>
    %39 = vector.shape_cast %38 : vector<1x192x64xf32> to vector<192x64xf32>
    %cst_16 = arith.constant dense<0.000000e+00> : vector<16x64xf32>
    %40 = tpu.matmul %37, %39, %cst_16 {dimension_numbers = #tpu.dot_dimension_numbers<[1], [0], [0], [1], [0, 0, 1, 1], [], []>} : vector<16x192xf32>, vector<192x64xf32>, vector<16x64xf32> -> vector<16x64xf32>
    %c0_17 = arith.constant 0 : index
    %c0_18 = arith.constant 0 : index
    %41 = vector.load %arg5[%c0_17, %c0_18] : memref<4x64xf32, #tpu.memory_space<vmem>>, vector<1x64xf32>
    %42 = vector.shape_cast %41 : vector<1x64xf32> to vector<64xf32>
    %43 = vector.shape_cast %42 : vector<64xf32> to vector<1x64xf32>
    %44 = vector.broadcast %43 : vector<1x64xf32> to vector<16x64xf32>
    %45 = arith.addf %40, %44 : vector<16x64xf32>
    %c2_i32_19 = arith.constant 2 : i32
    %46 = tpu.dynamic_rotate %45 by %c2_i32_19 dim 0 : vector<16x64xf32>, i32 -> vector<16x64xf32>
    %cst_20 = arith.constant 0.000000e+00 : f32
    %47 = vector.shape_cast %26 : vector<16x1xi1> to vector<16x1xi1>
    %48 = vector.broadcast %47 : vector<16x1xi1> to vector<16x64xi1>
    %49 = vector.broadcast %cst_20 : f32 to vector<16x64xf32>
    %50 = arith.select %48, %46, %49 : vector<16x64xi1>, vector<16x64xf32>
    %c1_i32_21 = arith.constant 1 : i32
    %51 = tpu.dynamic_rotate %45 by %c1_i32_21 dim 0 : vector<16x64xf32>, i32 -> vector<16x64xf32>
    %cst_22 = arith.constant 0.000000e+00 : f32
    %52 = vector.shape_cast %24 : vector<16x1xi1> to vector<16x1xi1>
    %53 = vector.broadcast %52 : vector<16x1xi1> to vector<16x64xi1>
    %54 = vector.broadcast %cst_22 : f32 to vector<16x64xf32>
    %55 = arith.select %53, %51, %54 : vector<16x64xi1>, vector<16x64xf32>
    %56 = tpu.concatenate %50, %55, %45 in 1 : vector<16x64xf32>, vector<16x64xf32>, vector<16x64xf32> -> vector<16x192xf32>
    %c1 = arith.constant 1 : index
    %c0_23 = arith.constant 0 : index
    %c0_24 = arith.constant 0 : index
    %57 = vector.load %arg4[%c1, %c0_23, %c0_24] : memref<4x192x64xf32, #tpu.memory_space<vmem>>, vector<1x192x64xf32>
    %58 = vector.shape_cast %57 : vector<1x192x64xf32> to vector<192x64xf32>
    %cst_25 = arith.constant dense<0.000000e+00> : vector<16x64xf32>
    %59 = tpu.matmul %56, %58, %cst_25 {dimension_numbers = #tpu.dot_dimension_numbers<[1], [0], [0], [1], [0, 0, 1, 1], [], []>} : vector<16x192xf32>, vector<192x64xf32>, vector<16x64xf32> -> vector<16x64xf32>
    %c1_26 = arith.constant 1 : index
    %c0_27 = arith.constant 0 : index
    %60 = vector.load %arg5[%c1_26, %c0_27] : memref<4x64xf32, #tpu.memory_space<vmem>>, vector<1x64xf32>
    %61 = vector.shape_cast %60 : vector<1x64xf32> to vector<64xf32>
    %62 = vector.shape_cast %61 : vector<64xf32> to vector<1x64xf32>
    %63 = vector.broadcast %62 : vector<1x64xf32> to vector<16x64xf32>
    %64 = arith.addf %59, %63 : vector<16x64xf32>
    %c2_i32_28 = arith.constant 2 : i32
    %65 = tpu.dynamic_rotate %64 by %c2_i32_28 dim 0 : vector<16x64xf32>, i32 -> vector<16x64xf32>
    %cst_29 = arith.constant 0.000000e+00 : f32
    %66 = vector.shape_cast %26 : vector<16x1xi1> to vector<16x1xi1>
    %67 = vector.broadcast %66 : vector<16x1xi1> to vector<16x64xi1>
    %68 = vector.broadcast %cst_29 : f32 to vector<16x64xf32>
    %69 = arith.select %67, %65, %68 : vector<16x64xi1>, vector<16x64xf32>
    %c1_i32_30 = arith.constant 1 : i32
    %70 = tpu.dynamic_rotate %64 by %c1_i32_30 dim 0 : vector<16x64xf32>, i32 -> vector<16x64xf32>
    %cst_31 = arith.constant 0.000000e+00 : f32
    %71 = vector.shape_cast %24 : vector<16x1xi1> to vector<16x1xi1>
    %72 = vector.broadcast %71 : vector<16x1xi1> to vector<16x64xi1>
    %73 = vector.broadcast %cst_31 : f32 to vector<16x64xf32>
    %74 = arith.select %72, %70, %73 : vector<16x64xi1>, vector<16x64xf32>
    %75 = tpu.concatenate %69, %74, %64 in 1 : vector<16x64xf32>, vector<16x64xf32>, vector<16x64xf32> -> vector<16x192xf32>
    %c2 = arith.constant 2 : index
    %c0_32 = arith.constant 0 : index
    %c0_33 = arith.constant 0 : index
    %76 = vector.load %arg4[%c2, %c0_32, %c0_33] : memref<4x192x64xf32, #tpu.memory_space<vmem>>, vector<1x192x64xf32>
    %77 = vector.shape_cast %76 : vector<1x192x64xf32> to vector<192x64xf32>
    %cst_34 = arith.constant dense<0.000000e+00> : vector<16x64xf32>
    %78 = tpu.matmul %75, %77, %cst_34 {dimension_numbers = #tpu.dot_dimension_numbers<[1], [0], [0], [1], [0, 0, 1, 1], [], []>} : vector<16x192xf32>, vector<192x64xf32>, vector<16x64xf32> -> vector<16x64xf32>
    %c2_35 = arith.constant 2 : index
    %c0_36 = arith.constant 0 : index
    %79 = vector.load %arg5[%c2_35, %c0_36] : memref<4x64xf32, #tpu.memory_space<vmem>>, vector<1x64xf32>
    %80 = vector.shape_cast %79 : vector<1x64xf32> to vector<64xf32>
    %81 = vector.shape_cast %80 : vector<64xf32> to vector<1x64xf32>
    %82 = vector.broadcast %81 : vector<1x64xf32> to vector<16x64xf32>
    %83 = arith.addf %78, %82 : vector<16x64xf32>
    %c2_i32_37 = arith.constant 2 : i32
    %84 = tpu.dynamic_rotate %83 by %c2_i32_37 dim 0 : vector<16x64xf32>, i32 -> vector<16x64xf32>
    %cst_38 = arith.constant 0.000000e+00 : f32
    %85 = vector.shape_cast %26 : vector<16x1xi1> to vector<16x1xi1>
    %86 = vector.broadcast %85 : vector<16x1xi1> to vector<16x64xi1>
    %87 = vector.broadcast %cst_38 : f32 to vector<16x64xf32>
    %88 = arith.select %86, %84, %87 : vector<16x64xi1>, vector<16x64xf32>
    %c1_i32_39 = arith.constant 1 : i32
    %89 = tpu.dynamic_rotate %83 by %c1_i32_39 dim 0 : vector<16x64xf32>, i32 -> vector<16x64xf32>
    %cst_40 = arith.constant 0.000000e+00 : f32
    %90 = vector.shape_cast %24 : vector<16x1xi1> to vector<16x1xi1>
    %91 = vector.broadcast %90 : vector<16x1xi1> to vector<16x64xi1>
    %92 = vector.broadcast %cst_40 : f32 to vector<16x64xf32>
    %93 = arith.select %91, %89, %92 : vector<16x64xi1>, vector<16x64xf32>
    %94 = tpu.concatenate %88, %93, %83 in 1 : vector<16x64xf32>, vector<16x64xf32>, vector<16x64xf32> -> vector<16x192xf32>
    %c3 = arith.constant 3 : index
    %c0_41 = arith.constant 0 : index
    %c0_42 = arith.constant 0 : index
    %95 = vector.load %arg4[%c3, %c0_41, %c0_42] : memref<4x192x64xf32, #tpu.memory_space<vmem>>, vector<1x192x64xf32>
    %96 = vector.shape_cast %95 : vector<1x192x64xf32> to vector<192x64xf32>
    %cst_43 = arith.constant dense<0.000000e+00> : vector<16x64xf32>
    %97 = tpu.matmul %94, %96, %cst_43 {dimension_numbers = #tpu.dot_dimension_numbers<[1], [0], [0], [1], [0, 0, 1, 1], [], []>} : vector<16x192xf32>, vector<192x64xf32>, vector<16x64xf32> -> vector<16x64xf32>
    %c3_44 = arith.constant 3 : index
    %c0_45 = arith.constant 0 : index
    %98 = vector.load %arg5[%c3_44, %c0_45] : memref<4x64xf32, #tpu.memory_space<vmem>>, vector<1x64xf32>
    %99 = vector.shape_cast %98 : vector<1x64xf32> to vector<64xf32>
    %100 = vector.shape_cast %99 : vector<64xf32> to vector<1x64xf32>
    %101 = vector.broadcast %100 : vector<1x64xf32> to vector<16x64xf32>
    %102 = arith.addf %97, %101 : vector<16x64xf32>
    %c0_46 = arith.constant 0 : index
    %c0_47 = arith.constant 0 : index
    %103 = vector.load %arg6[%c0_46, %c0_47] : memref<16x64xf32, #tpu.memory_space<vmem>>, vector<16x64xf32>
    tpu.vector_store %arg6[%c0_46, %c0_47], %102 {strides = array<i32>} : memref<16x64xf32, #tpu.memory_space<vmem>>, vector<16x64xf32>,
    return
  }
  func.func @transform_0(%arg0: i32) -> (i32, i32) {
    %c0_i32 = arith.constant 0 : i32
    %c0_i32_0 = arith.constant 0 : i32
    return %arg0, %c0_i32 : i32, i32
  }
  func.func @transform_1(%arg0: i32) -> (i32, i32) {
    %c0_i32 = arith.constant 0 : i32
    %c0_i32_0 = arith.constant 0 : i32
    %c0_i32_1 = arith.constant 0 : i32
    return %c0_i32, %c0_i32_0 : i32, i32
  }
  func.func @transform_2(%arg0: i32) -> (i32, i32) {
    %c0_i32 = arith.constant 0 : i32
    %c0_i32_0 = arith.constant 0 : i32
    %c0_i32_1 = arith.constant 0 : i32
    return %c0_i32, %c0_i32_0 : i32, i32
  }
  func.func @transform_3(%arg0: i32) -> (i32, i32, i32) {
    %c0_i32 = arith.constant 0 : i32
    %c0_i32_0 = arith.constant 0 : i32
    %c0_i32_1 = arith.constant 0 : i32
    %c0_i32_2 = arith.constant 0 : i32
    return %c0_i32, %c0_i32_0, %c0_i32_1 : i32, i32, i32
  }
  func.func @transform_4(%arg0: i32) -> (i32, i32) {
    %c0_i32 = arith.constant 0 : i32
    %c0_i32_0 = arith.constant 0 : i32
    %c0_i32_1 = arith.constant 0 : i32
    return %c0_i32, %c0_i32_0 : i32, i32
  }
  func.func @transform_5(%arg0: i32) -> (i32, i32) {
    %c0_i32 = arith.constant 0 : i32
    %c0_i32_0 = arith.constant 0 : i32
    return %arg0, %c0_i32 : i32, i32
  }
}

</mosaic_0001>

<bundles_post_ra>
// kernel: tpu_custom_call.1
= control target key start
LH: loop header
LB: loop body
LE: loop exit
PB: predicated region body
PF: predicated region fallthrough
CT: control target
= control target key end

     0   :  { %vm38_vm0 = vcmask 1041408   ;;  %vm31_vm1 = vcmask 15360   ;;  %s1364_s0 = inlined_call_operand.vmem [shape: f32[16,2], index: 0, kind: input, shape index: {}]   ;;  %s1365_s1 = inlined_call_operand.vmem [shape: f32[2,64], index: 1, kind: input, shape index: {}]   ;;  %s1366_s2 = inlined_call_operand.vmem [shape: f32[1,64], index: 2, kind: input, shape index: {}]   ;;  %s1367_s3 = inlined_call_operand.vmem [shape: f32[4,192,64], index: 3, kind: input, shape index: {}]   ;;  %s1368_s4 = inlined_call_operand.vmem [shape: f32[4,64], index: 4, kind: input, shape index: {}]   ;;  %s1369_s5 = inlined_call_operand.hbm [shape: f32[16,64], index: 5, kind: output, shape index: {}]  }
   0x1   :  { %v23_v0 = vld [vmem:[%s1365_s1] sm:$0x3]  ;;  %v22_v2 = vld [vmem:[%s1364_s0 + $0x8] sm:$0xff] }
   0x2   :  { %v21_v1 = vld [vmem:[%s1364_s0] sm:$0xff]  ;;  %799 = vmatprep.subr.msk.mxu0 %vm38_vm0, %v23_v0 }
   0x3   :  { %801 = vmatprep.mubr.msk.f32.mxu0 %vm31_vm1, %v21_v1 }
   0x4   :  { %10 = vsyncpa [#allocation3], 0  ;;  %800 = vmatpush3.msk.msra.mxu0 %vm38_vm0, %v23_v0  ;;  %v196_v3 = vld [vmem:[%s1367_s3 + $0x78] sm:$0xff]  ;;  %v831_v4 = vmov 0.0   ;;  %v195_v5 = vld [vmem:[%s1367_s3 + $0x70] sm:$0xff]  ;;  %v117_v27 = vlaneseq  ;;  %vm178_vm2 = vcmask 523264  }
   0x5   :  { %802 = vmatmul.mubr.msk.f32.vlgmr.msra.gmra.mxu0 %vm31_vm1, %v22_v2  ;;  %216 = vmatprep.subr.mxu1 %v831_v4  ;;  %v194_v6 = vld [vmem:[%s1367_s3 + $0x68] sm:$0xff]  ;;  %v193_v7 = vld [vmem:[%s1367_s3 + $0x60] sm:$0xff]  ;;  %v192_v8 = vld [vmem:[%s1367_s3 + $0x58] sm:$0xff]  ;;  %s833_s8 = smov [#allocation2]  }
   0x6   :  { %349 = vmatprep.subr.mxu0 %v831_v4  ;;  %217 = vmatpush1.msra.mxu1 %v196_v3  ;;  %v191_v9 = vld [vmem:[%s1367_s3 + $0x50] sm:$0xff]  ;;  %v190_v10 = vld [vmem:[%s1367_s3 + $0x48] sm:$0xff]  ;;  %v189_v11 = vld [vmem:[%s1367_s3 + $0x40] sm:$0xff]  ;;  %v972_v29 = vshrl.u32 %v117_v27, 7  ;;  %s697_s9 = sshll.u32 %s833_s8, 4  ;;  %s698_s9 = int_to_ptr.vmem [resolvable:$true] %s697_s9 }
   0x7   :  { %218 = vmatprep.subr.mxu1 %v831_v4  ;;  %v188_v12 = vld [vmem:[%s1367_s3 + $0x38] sm:$0xff]  ;;  %v187_v13 = vld [vmem:[%s1367_s3 + $0x30] sm:$0xff]  ;;  %v186_v14 = vld [vmem:[%s1367_s3 + $0x28] sm:$0xff]  ;;  %s809_s10 = scalar_lea.vmem %s698_s9, 256  ;;  %p814_p1 = scmp.lt.s32.totalorder %s698_s9, %s698_s9 }
   0x8   :  { %219 = vmatpush1.msra.mxu1 %v195_v5  ;;  %v185_v15 = vld [vmem:[%s1367_s3 + $0x20] sm:$0xff]  ;;  %v184_v16 = vld [vmem:[%s1367_s3 + $0x18] sm:$0xff]  ;;  %v183_v17 = vld [vmem:[%s1367_s3 + $0x10] sm:$0xff]  ;;  %v124_v33 = vand.u32 15, %v972_v29  ;;  %vm161_vm3 = vcmp.lt.s32.totalorder %v972_v29, 1  ;;  %vm150_vm5 = vcmp.lt.s32.totalorder %v972_v29, 2  ;;  %p810_p0 = scmp.ne.s32.totalorder %s698_s9, %s809_s10  ;;  %p815_p2 = scmp.lt.s32.totalorder %s809_s10, %s809_s10 }
   0x9   :  { %220 = vmatprep.subr.mxu1 %v831_v4  ;;  %v182_v18 = vld [vmem:[%s1367_s3 + $0x8] sm:$0xff]  ;;  %v181_v19 = vld [vmem:[%s1367_s3] sm:$0xff]  ;;  %v204_v20 = vld [vmem:[%s1367_s3 + $0xb8] sm:$0xff] }
   0xa   :  { %221 = vmatpush1.msra.mxu1 %v194_v6  ;;  %v203_v21 = vld [vmem:[%s1367_s3 + $0xb0] sm:$0xff]  ;;  %v202_v22 = vld [vmem:[%s1367_s3 + $0xa8] sm:$0xff]  ;;  %v201_v23 = vld [vmem:[%s1367_s3 + $0xa0] sm:$0xff]  ;;  %vm981_vm4 = vcmp.ge.s32.totalorder %v124_v33, 1  ;;  %vm994_vm6 = vcmp.ge.s32.totalorder %v124_v33, 2  ;;  %p816_p3 = por %p815_p2, %p814_p1 }
   0xb   :  { %222 = vmatprep.subr.mxu1 %v831_v4  ;;  %v200_v24 = vld [vmem:[%s1367_s3 + $0x98] sm:$0xff]  ;;  %v199_v25 = vld [vmem:[%s1367_s3 + $0x90] sm:$0xff]  ;;  %v198_v26 = vld [vmem:[%s1367_s3 + $0x88] sm:$0xff] }
   0xc   :  { %223 = vmatpush1.msra.mxu1 %v193_v7  ;;  %v197_v28 = vld [vmem:[%s1367_s3 + $0x80] sm:$0xff]  ;;  %v730_v52 = vld [vmem:[%s1367_s3 + $0x138] sm:$0xff]  ;;  %v729_v53 = vld [vmem:[%s1367_s3 + $0x130] sm:$0xff]  ;;  %p817_p4 = pnand %p816_p3, %p810_p0 }
   0xd   :  { %224 = vmatprep.subr.mxu1 %v831_v4  ;;  %v708_v30 = vld [vmem:[%s1366_s2] ss:$0 sm:$0xff]  ;;  %s832_s2 = smov 64   ;;  %350 = vmatpush1.msra.mxu0 %v730_v52  ;;  %v728_v54 = vld [vmem:[%s1367_s3 + $0x128] sm:$0xff]  ;;  %v726_v56 = vld [vmem:[%s1367_s3 + $0x118] sm:$0xff] }
   0xe   :  { %225 = vmatpush1.msra.mxu1 %v192_v8  ;;  %351 = vmatprep.subr.mxu0 %v831_v4  ;;  %v727_v55 = vld [vmem:[%s1367_s3 + $0x120] sm:$0xff]  ;;  %v725_v57 = vld [vmem:[%s1367_s3 + $0x110] sm:$0xff]  ;;  %v724_v58 = vld [vmem:[%s1367_s3 + $0x108] sm:$0xff] }
   0xf   :  { %226 = vmatprep.subr.mxu1 %v831_v4  ;;  %352 = vmatpush1.msra.mxu0 %v729_v53  ;;  %v723_v59 = vld [vmem:[%s1367_s3 + $0x100] sm:$0xff]  ;;  %v722_v60 = vld [vmem:[%s1367_s3 + $0xf8] sm:$0xff]  ;;  %v721_v61 = vld [vmem:[%s1367_s3 + $0xf0] sm:$0xff] }
  0x10   :  { %227 = vmatpush1.msra.mxu1 %v191_v9  ;;  %353 = vmatprep.subr.mxu0 %v831_v4  ;;  %v720_v62 = vld [vmem:[%s1367_s3 + $0xe8] sm:$0xff]  ;;  %v719_v63 = vld [vmem:[%s1367_s3 + $0xe0] sm:$0xff]  ;;  %v718_v0 = vld [vmem:[%s1367_s3 + $0xd8] sm:$0xff] }
  0x11   :  { %228 = vmatprep.subr.mxu1 %v831_v4  ;;  %354 = vmatpush1.msra.mxu0 %v728_v54  ;;  %v717_v1 = vld [vmem:[%s1367_s3 + $0xd0] sm:$0xff]  ;;  %v716_v2 = vld [vmem:[%s1367_s3 + $0xc8] sm:$0xff]  ;;  %v715_v3 = vld [vmem:[%s1367_s3 + $0xc0] sm:$0xff] }
  0x12   :  { %229 = vmatpush1.msra.mxu1 %v190_v10  ;;  %355 = vmatprep.subr.mxu0 %v831_v4  ;;  %v738_v5 = vld [vmem:[%s1367_s3 + $0x178] sm:$0xff]  ;;  %v737_v6 = vld [vmem:[%s1367_s3 + $0x170] sm:$0xff]  ;;  %v736_v7 = vld [vmem:[%s1367_s3 + $0x168] sm:$0xff] }
  0x13   :  { %230 = vmatprep.subr.mxu1 %v831_v4  ;;  %356 = vmatpush1.msra.mxu0 %v727_v55  ;;  %v735_v8 = vld [vmem:[%s1367_s3 + $0x160] sm:$0xff]  ;;  %v734_v9 = vld [vmem:[%s1367_s3 + $0x158] sm:$0xff]  ;;  %v733_v10 = vld [vmem:[%s1367_s3 + $0x150] sm:$0xff] }
  0x14   :  { %231 = vmatpush1.msra.mxu1 %v189_v11  ;;  %357 = vmatprep.subr.mxu0 %v831_v4  ;;  %v732_v11 = vld [vmem:[%s1367_s3 + $0x148] sm:$0xff]  ;;  %v742_v52 = vld [vmem:[%s1367_s3 + $0x180] sm:$0xff]  ;;  %v765_v53 = vld [vmem:[%s1367_s3 + $0x238] sm:$0xff] }
  0x15   :  { %232 = vmatprep.subr.mxu1 %v831_v4  ;;  %358 = vmatpush1.msra.mxu0 %v726_v56  ;;  %v764_v54 = vld [vmem:[%s1367_s3 + $0x230] sm:$0xff]  ;;  %v763_v55 = vld [vmem:[%s1367_s3 + $0x228] sm:$0xff]  ;;  %v762_v56 = vld [vmem:[%s1367_s3 + $0x220] sm:$0xff] }
  0x16   :  { %233 = vmatpush1.msra.mxu1 %v188_v12  ;;  %359 = vmatprep.subr.mxu0 %v831_v4  ;;  %v731_v12 = vld [vmem:[%s1367_s3 + $0x140] sm:$0xff] }
  0x17   :  { %234 = vmatprep.subr.mxu1 %v831_v4  ;;  %360 = vmatpush1.msra.mxu0 %v725_v57  ;;  %v761_v57 = vld [vmem:[%s1367_s3 + $0x218] sm:$0xff] }
  0x18   :  { %235 = vmatpush1.msra.mxu1 %v187_v13  ;;  %361 = vmatprep.subr.mxu0 %v831_v4  ;;  %v712_v13 = vld [vmem:[%s1368_s4] ss:$0 sm:$0xff] }
  0x19   :  { %236 = vmatprep.subr.mxu1 %v831_v4  ;;  %362 = vmatpush1.msra.mxu0 %v724_v58  ;;  %v760_v58 = vld [vmem:[%s1367_s3 + $0x210] sm:$0xff] }
  0x1a   :  { %237 = vmatpush1.msra.mxu1 %v186_v14  ;;  %363 = vmatprep.subr.mxu0 %v831_v4 }
  0x1b   :  { %238 = vmatprep.subr.mxu1 %v831_v4  ;;  %364 = vmatpush1.msra.mxu0 %v723_v59  ;;  %v759_v59 = vld [vmem:[%s1367_s3 + $0x208] sm:$0xff] }
  0x1c   :  { %239 = vmatpush1.msra.mxu1 %v185_v15  ;;  %365 = vmatprep.subr.mxu0 %v831_v4 }
  0x1d   :  { %240 = vmatprep.subr.mxu1 %v831_v4  ;;  %366 = vmatpush1.msra.mxu0 %v722_v60  ;;  %v758_v60 = vld [vmem:[%s1367_s3 + $0x200] sm:$0xff] }
  0x1e   :  { %241 = vmatpush1.msra.mxu1 %v184_v16  ;;  %367 = vmatprep.subr.mxu0 %v831_v4 }
  0x1f   :  { %242 = vmatprep.subr.mxu1 %v831_v4  ;;  %368 = vmatpush1.msra.mxu0 %v721_v61  ;;  %v739_v61 = vld [vmem:[%s1368_s4 + $0x1] ss:$0 sm:$0xff] }
  0x20   :  { %243 = vmatpush1.msra.mxu1 %v183_v17  ;;  %369 = vmatprep.subr.mxu0 %v831_v4 }
  0x21   :  { %244 = vmatprep.subr.mxu1 %v831_v4  ;;  %370 = vmatpush1.msra.mxu0 %v720_v62 }
  0x22   :  { %245 = vmatpush1.msra.mxu1 %v182_v18  ;;  %371 = vmatprep.subr.mxu0 %v831_v4 }
  0x23   :  { %246 = vmatprep.subr.mxu1 %v831_v4  ;;  %372 = vmatpush1.msra.mxu0 %v719_v63 }
  0x24   :  { %247 = vmatpush1.msra.mxu1 %v181_v19  ;;  %373 = vmatprep.subr.mxu0 %v831_v4 }
  0x25   :  { %264 = vmatprep.subr.mxu1 %v831_v4  ;;  %374 = vmatpush1.msra.mxu0 %v718_v0 }
  0x26   :  { %265 = vmatpush2.msra.mxu1 %v204_v20  ;;  %375 = vmatprep.subr.mxu0 %v831_v4 }
  0x27   :  { %266 = vmatprep.subr.mxu1 %v831_v4  ;;  %376 = vmatpush1.msra.mxu0 %v717_v1 }
  0x28   :  { %267 = vmatpush2.msra.mxu1 %v203_v21  ;;  %377 = vmatprep.subr.mxu0 %v831_v4 }
  0x29   :  { %268 = vmatprep.subr.mxu1 %v831_v4  ;;  %378 = vmatpush1.msra.mxu0 %v716_v2 }
  0x2a   :  { %269 = vmatpush2.msra.mxu1 %v202_v22  ;;  %379 = vmatprep.subr.mxu0 %v831_v4 }
  0x2b   :  { %270 = vmatprep.subr.mxu1 %v831_v4  ;;  %380 = vmatpush1.msra.mxu0 %v715_v3 }
  0x2c   :  { %271 = vmatpush2.msra.mxu1 %v201_v23  ;;  %397 = vmatprep.subr.mxu0 %v831_v4 }
  0x2d   :  { %272 = vmatprep.subr.mxu1 %v831_v4  ;;  %398 = vmatpush2.msra.mxu0 %v738_v5 }
  0x2e   :  { %273 = vmatpush2.msra.mxu1 %v200_v24  ;;  %399 = vmatprep.subr.mxu0 %v831_v4 }
  0x2f   :  { %274 = vmatprep.subr.mxu1 %v831_v4  ;;  %400 = vmatpush2.msra.mxu0 %v737_v6 }
  0x30   :  { %275 = vmatpush2.msra.mxu1 %v199_v25  ;;  %401 = vmatprep.subr.mxu0 %v831_v4 }
  0x31   :  { %276 = vmatprep.subr.mxu1 %v831_v4  ;;  %402 = vmatpush2.msra.mxu0 %v736_v7 }
  0x32   :  { %277 = vmatpush2.msra.mxu1 %v198_v26  ;;  %403 = vmatprep.subr.mxu0 %v831_v4 }
  0x33   :  { %278 = vmatprep.subr.mxu1 %v831_v4  ;;  %404 = vmatpush2.msra.mxu0 %v735_v8 }
  0x34   :  { %279 = vmatpush2.msra.mxu1 %v197_v28  ;;  %405 = vmatprep.subr.mxu0 %v831_v4 }
  0x35   :  { %482 = vmatprep.subr.mxu1 %v831_v4  ;;  %406 = vmatpush2.msra.mxu0 %v734_v9 }
  0x36   :  { %407 = vmatprep.subr.mxu0 %v831_v4 }
  0x37   :  { %408 = vmatpush2.msra.mxu0 %v733_v10 }
  0x38   :  { %409 = vmatprep.subr.mxu0 %v831_v4 }
  0x39   :  { %410 = vmatpush2.msra.mxu0 %v732_v11 }
  0x3a   :  { %411 = vmatprep.subr.mxu0 %v831_v4 }
  0x3b   :  { %412 = vmatpush2.msra.mxu0 %v731_v12 }
  0x3c   :  { %615 = vmatprep.subr.mxu0 %v831_v4 }
  0xc5   :  { %v803_v31 = vpop.f32.mrf.mxu0 }
  0xc6   :  { %v114_v32 = vadd.f32 %v803_v31, %v708_v30 }
  0xc7   :  { %v108_v34 = vpop.f32.mrf.mxu0 }
  0xc8   :  { %v109_v35 = vadd.f32 %v708_v30, %v108_v34  ;;  %v160_v36 = vrot.slane %v114_v32, 7  ;;  %v149_v43 = vrot.slane %v114_v32, 6 }
  0xca   :  { %v159_v37 = vrot.slane %v109_v35, 7  ;;  %713 = vmatprep.mubr.msk.f32.mxu1 %vm178_vm2, %v109_v35  ;;  %v148_v42 = vrot.slane %v109_v35, 6  ;;  %v757_v35 = vld [vmem:[%s1367_s3 + $0x1f8] sm:$0xff] }
  0xcc   :  { %v163_v39 = vsel %vm161_vm3, %v160_v36, %v159_v37  ;;  %v162_v41 = vsel %vm161_vm3, %v159_v37, %v160_v36  ;;  %v152_v45 = vsel %vm150_vm5, %v149_v43, %v148_v42  ;;  %v151_v50 = vsel %vm150_vm5, %v148_v42, %v149_v43  ;;  %v756_v36 = vld [vmem:[%s1367_s3 + $0x1f0] sm:$0xff]  ;;  %v755_v37 = vld [vmem:[%s1367_s3 + $0x1e8] sm:$0xff]  ;;  %v750_v43 = vld [vmem:[%s1367_s3 + $0x1c0] sm:$0xff] }
  0xcd   :  { %v168_v40 = vsel %vm981_vm4, %v163_v39, 0.0  ;;  %v157_v47 = vsel %vm994_vm6, %v152_v45, 0.0  ;;  %v754_v39 = vld [vmem:[%s1367_s3 + $0x1e0] sm:$0xff]  ;;  %v751_v42 = vld [vmem:[%s1367_s3 + $0x1c8] sm:$0xff]  ;;  %v749_v45 = vld [vmem:[%s1367_s3 + $0x1b8] sm:$0xff] }
  0xce   :  { %172 = vrot.lane.b32.xlu0 %v168_v40, %s832_s2  ;;  %v753_v40 = vld [vmem:[%s1367_s3 + $0x1d8] sm:$0xff] }
  0xd2   :  { %174 = vrot.lane.b32.xlu0 %v162_v41, %s832_s2  ;;  %v752_v41 = vld [vmem:[%s1367_s3 + $0x1d0] sm:$0xff] }
 0x140   :  { %v173_v46 = vpop.permute.xlu0 %172 }
 0x141   :  { %v179_v48 = vsel %vm178_vm2, %v157_v47, %v173_v46  ;;  %v748_v46 = vld [vmem:[%s1367_s3 + $0x1b0] sm:$0xff]  ;;  %v747_v47 = vld [vmem:[%s1367_s3 + $0x1a8] sm:$0xff] }
 0x142   :  { %281 = vmatmul.mubr.f32.vlgmr.msra.gmra.mxu1 %v179_v48  ;;  %v746_v48 = vld [vmem:[%s1367_s3 + $0x1a0] sm:$0xff] }
 0x143   :  { %714 = vmatprep.mubr.msk.f32.mxu1 %vm178_vm2, %v114_v32  ;;  %483 = vmatpush1.msra.mxu1 %v757_v35  ;;  %v769_v35 = vld [vmem:[%s1367_s3 + $0x240] sm:$0xff] }
 0x144   :  { %v175_v49 = vpop.permute.xlu0 %174  ;;  %484 = vmatprep.subr.mxu1 %v831_v4 }
 0x145   :  { %v180_v51 = vsel %vm178_vm2, %v151_v50, %v175_v49  ;;  %485 = vmatpush1.msra.mxu1 %v756_v36  ;;  %v745_v49 = vld [vmem:[%s1367_s3 + $0x198] sm:$0xff]  ;;  %v744_v50 = vld [vmem:[%s1367_s3 + $0x190] sm:$0xff] }
 0x146   :  { %286 = vmatmul.mubr.f32.gmra.mxu1 %v180_v51  ;;  %486 = vmatprep.subr.mxu1 %v831_v4  ;;  %v743_v51 = vld [vmem:[%s1367_s3 + $0x188] sm:$0xff]  ;;  %v792_v36 = vld [vmem:[%s1367_s3 + $0x2f8] sm:$0xff] }
 0x147   :  { %487 = vmatpush1.msra.mxu1 %v755_v37  ;;  %v791_v37 = vld [vmem:[%s1367_s3 + $0x2f0] sm:$0xff] }
 0x148   :  { %488 = vmatprep.subr.mxu1 %v831_v4 }
 0x149   :  { %489 = vmatpush1.msra.mxu1 %v754_v39  ;;  %v790_v39 = vld [vmem:[%s1367_s3 + $0x2e8] sm:$0xff] }
 0x14a   :  { %490 = vmatprep.subr.mxu1 %v831_v4 }
 0x14b   :  { %491 = vmatpush1.msra.mxu1 %v753_v40  ;;  %v789_v40 = vld [vmem:[%s1367_s3 + $0x2e0] sm:$0xff] }
 0x14c   :  { %492 = vmatprep.subr.mxu1 %v831_v4 }
 0x14d   :  { %493 = vmatpush1.msra.mxu1 %v752_v41  ;;  %v788_v41 = vld [vmem:[%s1367_s3 + $0x2d8] sm:$0xff] }
 0x14e   :  { %494 = vmatprep.subr.mxu1 %v831_v4 }
 0x14f   :  { %495 = vmatpush1.msra.mxu1 %v751_v42  ;;  %v787_v42 = vld [vmem:[%s1367_s3 + $0x2d0] sm:$0xff] }
 0x150   :  { %496 = vmatprep.subr.mxu1 %v831_v4 }
 0x151   :  { %497 = vmatpush1.msra.mxu1 %v750_v43  ;;  %v786_v43 = vld [vmem:[%s1367_s3 + $0x2c8] sm:$0xff] }
 0x152   :  { %498 = vmatprep.subr.mxu1 %v831_v4 }
 0x153   :  { %499 = vmatpush1.msra.mxu1 %v749_v45  ;;  %v785_v45 = vld [vmem:[%s1367_s3 + $0x2c0] sm:$0xff] }
 0x154   :  { %500 = vmatprep.subr.mxu1 %v831_v4 }
 0x155   :  { %501 = vmatpush1.msra.mxu1 %v748_v46  ;;  %v766_v46 = vld [vmem:[%s1368_s4 + $0x2] ss:$0 sm:$0xff] }
 0x156   :  { %502 = vmatprep.subr.mxu1 %v831_v4 }
 0x157   :  { %503 = vmatpush1.msra.mxu1 %v747_v47 }
 0x158   :  { %504 = vmatprep.subr.mxu1 %v831_v4 }
 0x159   :  { %505 = vmatpush1.msra.mxu1 %v746_v48 }
 0x15a   :  { %506 = vmatprep.subr.mxu1 %v831_v4 }
 0x15b   :  { %507 = vmatpush1.msra.mxu1 %v745_v49 }
 0x15c   :  { %508 = vmatprep.subr.mxu1 %v831_v4 }
 0x15d   :  { %509 = vmatpush1.msra.mxu1 %v744_v50 }
 0x15e   :  { %510 = vmatprep.subr.mxu1 %v831_v4 }
 0x15f   :  { %511 = vmatpush1.msra.mxu1 %v743_v51 }
 0x160   :  { %512 = vmatprep.subr.mxu1 %v831_v4 }
 0x161   :  { %513 = vmatpush1.msra.mxu1 %v742_v52 }
 0x162   :  { %530 = vmatprep.subr.mxu1 %v831_v4 }
 0x163   :  { %531 = vmatpush2.msra.mxu1 %v765_v53 }
 0x164   :  { %532 = vmatprep.subr.mxu1 %v831_v4 }
 0x165   :  { %533 = vmatpush2.msra.mxu1 %v764_v54 }
 0x166   :  { %534 = vmatprep.subr.mxu1 %v831_v4 }
 0x167   :  { %535 = vmatpush2.msra.mxu1 %v763_v55 }
 0x168   :  { %536 = vmatprep.subr.mxu1 %v831_v4 }
 0x169   :  { %537 = vmatpush2.msra.mxu1 %v762_v56 }
 0x16a   :  { %538 = vmatprep.subr.mxu1 %v831_v4 }
 0x16b   :  { %539 = vmatpush2.msra.mxu1 %v761_v57 }
 0x16c   :  { %540 = vmatprep.subr.mxu1 %v831_v4 }
 0x16d   :  { %541 = vmatpush2.msra.mxu1 %v760_v58 }
 0x16e   :  { %542 = vmatprep.subr.mxu1 %v831_v4 }
 0x16f   :  { %543 = vmatpush2.msra.mxu1 %v759_v59 }
 0x170   :  { %544 = vmatprep.subr.mxu1 %v831_v4 }
 0x171   :  { %545 = vmatpush2.msra.mxu1 %v758_v60 }
 0x202   :  { %v282_v14 = vpop.f32.mrf.mxu1 }
 0x203   :  { %v283_v15 = vadd.f32 %v712_v13, %v282_v14 }
 0x204   :  { %v284_v16 = vpop.f32.mrf.mxu1 }
 0x205   :  { %740 = vmatprep.mubr.msk.f32.mxu0 %vm178_vm2, %v283_v15  ;;  %v297_v20 = vrot.slane %v283_v15, 7  ;;  %v291_v26 = vrot.slane %v283_v15, 6 }
 0x206   :  { %v287_v17 = vpop.f32.mrf.mxu1 }
 0x207   :  { %v288_v18 = vadd.f32 %v712_v13, %v287_v17 }
 0x208   :  { %v289_v19 = vpop.f32.mrf.mxu1 }
 0x209   :  { %v298_v21 = vrot.slane %v288_v18, 7  ;;  %v292_v25 = vrot.slane %v288_v18, 6  ;;  %v784_v19 = vld [vmem:[%s1367_s3 + $0x2b8] sm:$0xff] }
 0x20b   :  { %v300_v22 = vsel %vm161_vm3, %v298_v21, %v297_v20  ;;  %v299_v24 = vsel %vm161_vm3, %v297_v20, %v298_v21  ;;  %v294_v27 = vsel %vm150_vm5, %v292_v25, %v291_v26  ;;  %v293_v33 = vsel %vm150_vm5, %v291_v26, %v292_v25  ;;  %v783_v20 = vld [vmem:[%s1367_s3 + $0x2b0] sm:$0xff]  ;;  %v782_v21 = vld [vmem:[%s1367_s3 + $0x2a8] sm:$0xff]  ;;  %v777_v26 = vld [vmem:[%s1367_s3 + $0x280] sm:$0xff] }
 0x20c   :  { %v301_v23 = vsel %vm981_vm4, %v300_v22, 0.0  ;;  %v295_v30 = vsel %vm994_vm6, %v294_v27, 0.0  ;;  %v781_v22 = vld [vmem:[%s1367_s3 + $0x2a0] sm:$0xff]  ;;  %v778_v25 = vld [vmem:[%s1367_s3 + $0x288] sm:$0xff]  ;;  %v776_v27 = vld [vmem:[%s1367_s3 + $0x278] sm:$0xff] }
 0x20d   :  { %305 = vrot.lane.b32.xlu1 %v301_v23, %s832_s2  ;;  %v780_v23 = vld [vmem:[%s1367_s3 + $0x298] sm:$0xff] }
 0x211   :  { %307 = vrot.lane.b32.xlu1 %v299_v24, %s832_s2  ;;  %v779_v24 = vld [vmem:[%s1367_s3 + $0x290] sm:$0xff] }
 0x27f   :  { %v306_v28 = vpop.permute.xlu1 %305 }
 0x280   :  { %v311_v31 = vsel %vm178_vm2, %v295_v30, %v306_v28  ;;  %v775_v28 = vld [vmem:[%s1367_s3 + $0x270] sm:$0xff]  ;;  %v774_v30 = vld [vmem:[%s1367_s3 + $0x268] sm:$0xff] }
 0x281   :  { %414 = vmatmul.mubr.f32.vlgmr.msra.gmra.mxu0 %v311_v31  ;;  %v773_v31 = vld [vmem:[%s1367_s3 + $0x260] sm:$0xff] }
 0x282   :  { %741 = vmatprep.mubr.msk.f32.mxu0 %vm178_vm2, %v288_v18  ;;  %616 = vmatpush1.msra.mxu0 %v784_v19 }
 0x283   :  { %v308_v32 = vpop.permute.xlu1 %307  ;;  %617 = vmatprep.subr.mxu0 %v831_v4 }
 0x284   :  { %v312_v34 = vsel %vm178_vm2, %v293_v33, %v308_v32  ;;  %618 = vmatpush1.msra.mxu0 %v783_v20  ;;  %v772_v32 = vld [vmem:[%s1367_s3 + $0x258] sm:$0xff]  ;;  %v771_v33 = vld [vmem:[%s1367_s3 + $0x250] sm:$0xff] }
 0x285   :  { %419 = vmatmul.mubr.f32.gmra.mxu0 %v312_v34  ;;  %619 = vmatprep.subr.mxu0 %v831_v4  ;;  %v770_v34 = vld [vmem:[%s1367_s3 + $0x248] sm:$0xff] }
 0x286   :  { %620 = vmatpush1.msra.mxu0 %v782_v21 }
 0x287   :  { %621 = vmatprep.subr.mxu0 %v831_v4 }
 0x288   :  { %622 = vmatpush1.msra.mxu0 %v781_v22 }
 0x289   :  { %623 = vmatprep.subr.mxu0 %v831_v4 }
 0x28a   :  { %624 = vmatpush1.msra.mxu0 %v780_v23 }
 0x28b   :  { %625 = vmatprep.subr.mxu0 %v831_v4 }
 0x28c   :  { %626 = vmatpush1.msra.mxu0 %v779_v24 }
 0x28d   :  { %627 = vmatprep.subr.mxu0 %v831_v4 }
 0x28e   :  { %628 = vmatpush1.msra.mxu0 %v778_v25 }
 0x28f   :  { %629 = vmatprep.subr.mxu0 %v831_v4 }
 0x290   :  { %630 = vmatpush1.msra.mxu0 %v777_v26 }
 0x291   :  { %631 = vmatprep.subr.mxu0 %v831_v4 }
 0x292   :  { %632 = vmatpush1.msra.mxu0 %v776_v27 }
 0x293   :  { %633 = vmatprep.subr.mxu0 %v831_v4 }
 0x294   :  { %634 = vmatpush1.msra.mxu0 %v775_v28 }
 0x295   :  { %635 = vmatprep.subr.mxu0 %v831_v4 }
 0x296   :  { %636 = vmatpush1.msra.mxu0 %v774_v30 }
 0x297   :  { %637 = vmatprep.subr.mxu0 %v831_v4 }
 0x298   :  { %638 = vmatpush1.msra.mxu0 %v773_v31 }
 0x299   :  { %639 = vmatprep.subr.mxu0 %v831_v4 }
 0x29a   :  { %640 = vmatpush1.msra.mxu0 %v772_v32 }
 0x29b   :  { %641 = vmatprep.subr.mxu0 %v831_v4 }
 0x29c   :  { %642 = vmatpush1.msra.mxu0 %v771_v33 }
 0x29d   :  { %643 = vmatprep.subr.mxu0 %v831_v4 }
 0x29e   :  { %644 = vmatpush1.msra.mxu0 %v770_v34 }
 0x29f   :  { %645 = vmatprep.subr.mxu0 %v831_v4 }
 0x2a0   :  { %646 = vmatpush1.msra.mxu0 %v769_v35 }
 0x2a1   :  { %663 = vmatprep.subr.mxu0 %v831_v4 }
 0x2a2   :  { %664 = vmatpush2.msra.mxu0 %v792_v36 }
 0x2a3   :  { %665 = vmatprep.subr.mxu0 %v831_v4 }
 0x2a4   :  { %666 = vmatpush2.msra.mxu0 %v791_v37 }
 0x2a5   :  { %667 = vmatprep.subr.mxu0 %v831_v4 }
 0x2a6   :  { %668 = vmatpush2.msra.mxu0 %v790_v39 }
 0x2a7   :  { %669 = vmatprep.subr.mxu0 %v831_v4 }
 0x2a8   :  { %670 = vmatpush2.msra.mxu0 %v789_v40 }
 0x2a9   :  { %671 = vmatprep.subr.mxu0 %v831_v4 }
 0x2aa   :  { %672 = vmatpush2.msra.mxu0 %v788_v41 }
 0x2ab   :  { %673 = vmatprep.subr.mxu0 %v831_v4 }
 0x2ac   :  { %674 = vmatpush2.msra.mxu0 %v787_v42 }
 0x2ad   :  { %675 = vmatprep.subr.mxu0 %v831_v4 }
 0x2ae   :  { %676 = vmatpush2.msra.mxu0 %v786_v43 }
 0x2af   :  { %677 = vmatprep.subr.mxu0 %v831_v4 }
 0x2b0   :  { %678 = vmatpush2.msra.mxu0 %v785_v45 }
 0x341   :  { %v415_v62 = vpop.f32.mrf.mxu0 }
 0x342   :  { %v416_v63 = vadd.f32 %v739_v61, %v415_v62 }
 0x343   :  { %v417_v0 = vpop.f32.mrf.mxu0 }
 0x344   :  { %767 = vmatprep.mubr.msk.f32.mxu1 %vm178_vm2, %v416_v63  ;;  %v430_v5 = vrot.slane %v416_v63, 7  ;;  %v424_v11 = vrot.slane %v416_v63, 6 }
 0x345   :  { %v420_v1 = vpop.f32.mrf.mxu0 }
 0x346   :  { %v421_v2 = vadd.f32 %v739_v61, %v420_v1  ;;  %v793_v1 = vld [vmem:[%s1368_s4 + $0x3] ss:$0 sm:$0xff] }
 0x347   :  { %v422_v3 = vpop.f32.mrf.mxu0 }
 0x348   :  { %v431_v6 = vrot.slane %v421_v2, 7  ;;  %v425_v10 = vrot.slane %v421_v2, 6 }
 0x34a   :  { %v432_v7 = vsel %vm161_vm3, %v430_v5, %v431_v6  ;;  %v433_v8 = vsel %vm161_vm3, %v431_v6, %v430_v5  ;;  %v427_v12 = vsel %vm150_vm5, %v425_v10, %v424_v11  ;;  %v426_v17 = vsel %vm150_vm5, %v424_v11, %v425_v10 }
 0x34b   :  { %440 = vrot.lane.b32.xlu1 %v432_v7, %s832_s2  ;;  %v434_v9 = vsel %vm981_vm4, %v433_v8, 0.0  ;;  %v428_v14 = vsel %vm994_vm6, %v427_v12, 0.0 }
 0x34c   :  { %438 = vrot.lane.b32.xlu0 %v434_v9, %s832_s2 }
 0x3bd   :  { %v441_v16 = vpop.permute.xlu1 %440 }
 0x3be   :  { %v439_v13 = vpop.permute.xlu0 %438  ;;  %v445_v18 = vsel %vm178_vm2, %v426_v17, %v441_v16 }
 0x3bf   :  { %v444_v15 = vsel %vm178_vm2, %v428_v14, %v439_v13 }
 0x3c0   :  { %547 = vmatmul.mubr.f32.vlgmr.msra.gmra.mxu1 %v444_v15 }
 0x3c1   :  { %768 = vmatprep.mubr.msk.f32.mxu1 %vm178_vm2, %v421_v2 }
 0x3c4   :  { %552 = vmatmul.mubr.f32.gmra.mxu1 %v445_v18 }
 0x480   :  { %v548_v47 = vpop.f32.mrf.mxu1 }
 0x481   :  { %v549_v48 = vadd.f32 %v766_v46, %v548_v47 }
 0x482   :  { %v550_v49 = vpop.f32.mrf.mxu1 }
 0x483   :  { %794 = vmatprep.mubr.msk.f32.mxu0 %vm178_vm2, %v549_v48  ;;  %v563_v53 = vrot.slane %v549_v48, 7  ;;  %v557_v58 = vrot.slane %v549_v48, 6 }
 0x484   :  { %v553_v50 = vpop.f32.mrf.mxu1 }
 0x485   :  { %v554_v51 = vadd.f32 %v766_v46, %v553_v50 }
 0x486   :  { %v555_v52 = vpop.f32.mrf.mxu1 }
 0x487   :  { %v564_v54 = vrot.slane %v554_v51, 7  ;;  %v558_v57 = vrot.slane %v554_v51, 6 }
 0x489   :  { %v565_v4 = vsel %vm161_vm3, %v563_v53, %v564_v54  ;;  %v566_v55 = vsel %vm161_vm3, %v564_v54, %v563_v53  ;;  %v560_v59 = vsel %vm150_vm5, %v558_v57, %v557_v58  ;;  %v559_v38 = vsel %vm150_vm5, %v557_v58, %v558_v57 }
 0x48a   :  { %573 = vrot.lane.b32.xlu1 %v565_v4, %s832_s2  ;;  %v567_v56 = vsel %vm981_vm4, %v566_v55, 0.0  ;;  %v561_v61 = vsel %vm994_vm6, %v560_v59, 0.0 }
 0x48b   :  { %571 = vrot.lane.b32.xlu0 %v567_v56, %s832_s2 }
 0x4fc   :  { %v574_v63 = vpop.permute.xlu1 %573 }
 0x4fd   :  { %v572_v60 = vpop.permute.xlu0 %571  ;;  %v578_v0 = vsel %vm178_vm2, %v559_v38, %v574_v63 }
 0x4fe   :  { %v577_v62 = vsel %vm178_vm2, %v561_v61, %v572_v60 }
 0x4ff   :  { %680 = vmatmul.mubr.f32.vlgmr.msra.gmra.mxu0 %v577_v62 }
 0x500   :  { %795 = vmatprep.mubr.msk.f32.mxu0 %vm178_vm2, %v554_v51 }
 0x503   :  { %685 = vmatmul.mubr.f32.gmra.mxu0 %v578_v0 }
 0x5bf   :  { %v681_v2 = vpop.f32.mrf.mxu0 }
 0x5c0   :  { %v682_v3 = vadd.f32 %v793_v1, %v681_v2 }
 0x5c1   :  { %v683_v44 = vpop.f32.mrf.mxu0 }
 0x5c2   :  { %690 = vst.msk [vmem:[#allocation2] sm:$0xff] %vm178_vm2, %v682_v3 }
 0x5c3   :  { %v686_v5 = vpop.f32.mrf.mxu0 }
 0x5c4   :  { %v687_v6 = vadd.f32 %v793_v1, %v686_v5 }
 0x5c5   :  { %v688_v7 = vpop.f32.mrf.mxu0 }
 0x5c6   :  { %691 = vst.msk [vmem:[#allocation2 + $0x8] sm:$0xff] %vm178_vm2, %v687_v6 }
 0x5c7   :  { %820 = shalt.err (!%p817_p4)
}
 0x5c8   :  { %s834_s4 = smov 128   ;;  %s835_s11 = smov 8  }
 0x5c9   :  { %703 = dma.vmem_to_hbm [thread:$0]  %s698_s9, 256, %s1369_s5, [#allocation3], %s834_s4, %s834_s4, %s835_s11  }
 0x5ca   :  { %829 = dma.done.wait [#allocation3], 256  }
 0x5cb   :  { %830 = vsyncadd [#allocation3], 4294967040 }
 0x5cc   :  { %707 = vsyncpa [#allocation3], 1 }

</bundles_post_ra>
